<compile_context>
chip_gen: v7x
topology: tpu7x:2x2x1
jax: 0.10.0
libtpu: 0.0.40
codegen_flags: <defaults>
</compile_context>

<pallas_src>
import functools

import jax
import jax.numpy as jnp
from jax import lax
from jax.experimental import pallas as pl
from jax.experimental.pallas import tpu as pltpu


# ----------------------------------------------------------------------------
# Single fused kernel: image per-frame dense -> masked RNN -> text embedding /
#                      mean-pool / dense -> dense1/relu -> dense2/sigmoid
# ----------------------------------------------------------------------------
def _fused_forward_kernel(
    x_img_ref, lens_ref, tok_ref, pool_ref, emb_tab_ref,
    w_img_ref, b_img_ref,
    wx_ref, wh_ref, b_h_ref,
    w_txt_ref, b_txt_ref,
    w1_ref, b1_ref,
    w2_ref, b2_ref,
    o_ref,
    xproj_ref,
    *, B, T,
):
    f32 = jnp.float32

    # ---- image_module: per-frame dense + relu for all B*T frames at once ----
    emb = jnp.dot(x_img_ref[...], w_img_ref[...], preferred_element_type=f32)
    emb = jnp.maximum(emb + b_img_ref[...], 0.0)                       # (B*T, De)

    # ---- recurrence input projection, hoisted out of the serial loop ----
    # Stored b-major in a VMEM scratch; per-step slabs are read back strided.
    xproj_ref[...] = (jnp.dot(emb, wx_ref[...], preferred_element_type=f32)
                      + b_h_ref[...])                                  # (B*T, Dh)

    wh = wh_ref[...]                                                   # (Dh, Dh)
    lens = lens_ref[...]                                               # (B, 1) int32
    Dh = wh.shape[1]

    # ---- masked Elman recurrence ----
    #   h_t = tanh(xproj_t + h_{t-1} @ Wh), updated only while t < image_lens.
    # Step-t rows of the b-major projection are {b*T + t}: a single strided
    # VMEM read (stride=T) replaces the old per-step B-row slice + concat.
    # TODO(synk): keeping Wh resident in the MXU (pltpu.matmul_push_rhs /
    # matmul_acc_lhs / matmul_pop) would shave the per-step RHS push latency;
    # kept as jnp.dot for lowering robustness.
    def step(t, h):
        x_t = xproj_ref[pl.ds(t, B, stride=T), :]                      # (B, Dh)
        h_new = jnp.tanh(x_t + jnp.dot(h, wh, preferred_element_type=f32))
        keep = t < lens                                                # (B, 1) int cmp
        return jnp.where(keep, h_new, h)

    h = lax.fori_loop(0, T, step, jnp.zeros((B, Dh), f32), unroll=True)

    # ---- text_module fused in-kernel ----
    # Embedding gather == one-hot(tokens) @ emb_table (MXU); mean pool == a
    # constant (B, B*L) pooling matrix with rows of 1/L.
    V = emb_tab_ref.shape[0]
    iota = lax.broadcasted_iota(jnp.int32, (tok_ref.shape[0], V), 1)   # (B*L, V)
    onehot = (tok_ref[...] == iota).astype(f32)                        # (B*L, V)
    tok_feat = jnp.dot(onehot, emb_tab_ref[...],
                       preferred_element_type=f32)                     # (B*L, E)
    tok_mean = jnp.dot(pool_ref[...], tok_feat,
                       preferred_element_type=f32)                     # (B, E)
    text_emb = jnp.maximum(
        jnp.dot(tok_mean, w_txt_ref[...], preferred_element_type=f32)
        + b_txt_ref[...], 0.0)                                         # (B, Dt)

    # ---- fusion head (hidden1 zero-padded 120 -> 128: lane-dense, same math) ----
    fused = jnp.concatenate([h, text_emb], axis=-1)                    # (B, Dh+Dt)
    h1 = jnp.maximum(
        jnp.dot(fused, w1_ref[...], preferred_element_type=f32) + b1_ref[...],
        0.0)                                                           # (B, 128)
    # dense2 (128 -> 1): VPU multiply + lane reduce instead of an N=1 MXU matmul
    y = jnp.sum(h1 * w2_ref[...], axis=-1, keepdims=True) + b2_ref[...]
    o_ref[...] = (1.0 / (1.0 + jnp.exp(-y))).astype(o_ref.dtype)       # sigmoid


def fused_forward(x_img, lens_i, tok_flat, pool, p, *, B, T):
    args = (
        x_img, lens_i, tok_flat, pool, p["emb_table"],
        p["w_img"], p["b_img"],
        p["wx"], p["wh"], p["b_h"],
        p["w_txt"], p["b_txt"],
        p["w1"], p["b1"],
        p["w2_row"], p["b2"],
    )

    def full_spec(arr):
        nd = arr.ndim
        return pl.BlockSpec(arr.shape, lambda i, _nd=nd: (0,) * _nd)

    Dh = p["wh"].shape[0]

    return pl.pallas_call(
        functools.partial(_fused_forward_kernel, B=B, T=T),
        out_shape=jax.ShapeDtypeStruct((B, 1), jnp.float32),
        grid=(1,),
        in_specs=[full_spec(a) for a in args],
        out_specs=pl.BlockSpec((B, 1), lambda i: (0, 0)),
        scratch_shapes=[pltpu.VMEM((B * T, Dh), jnp.float32)],
        compiler_params=pltpu.CompilerParams(
            dimension_semantics=("arbitrary",)),
    )(*args)


# ----------------------------------------------------------------------------
# Parameter construction (deterministic, synthetic "checkpoint").
# dense1/dense2 are stored with the 120-wide hidden zero-padded to 128 lanes
# (extra lanes are exact zeros -> identical math, lane-dense layout).
# ----------------------------------------------------------------------------
def init_params(key, *, C, H, W, De, Dh, vocab, tok_emb, Dt,
                hidden1=120, hidden1_pad=128):
    ks = jax.random.split(key, 8)
    img_in = C * H * W
    total_emb = Dh + Dt

    def lin(k, fan_in, shape):
        return (jax.random.normal(k, shape, jnp.float32)
                / jnp.sqrt(fan_in)).astype(jnp.float32)

    w1 = lin(ks[5], total_emb, (total_emb, hidden1))    # dense1.weight^T
    w2 = lin(ks[6], hidden1, (hidden1, 1))              # dense2.weight^T

    w1_pad = jnp.zeros((total_emb, hidden1_pad), jnp.float32).at[:, :hidden1].set(w1)
    w2_row = jnp.zeros((1, hidden1_pad), jnp.float32).at[:, :hidden1].set(w2.T)

    return {
        # synthetic image_module: per-frame flatten -> linear -> relu
        "w_img": lin(ks[0], img_in, (img_in, De)),
        "b_img": jnp.zeros((1, De), jnp.float32),
        # synthetic image_recurrence_module: length-masked Elman RNN (last state)
        "wx": lin(ks[1], De, (De, Dh)),
        "wh": lin(ks[2], Dh, (Dh, Dh)),
        "b_h": jnp.zeros((1, Dh), jnp.float32),
        # synthetic text_module: token embedding -> mean pool -> linear -> relu
        "emb_table": lin(ks[3], tok_emb, (vocab, tok_emb)),
        "w_txt": lin(ks[4], tok_emb, (tok_emb, Dt)),
        "b_txt": jnp.zeros((1, Dt), jnp.float32),
        # head: dense1 (total_emb -> 128 padded), dense2 (128 padded -> 1) as a row
        "w1": w1_pad,                                   # (Dh+Dt, 128)
        "b1": jnp.zeros((1, hidden1_pad), jnp.float32),
        "w2_row": w2_row,                               # (1, 128)
        "b2": jnp.zeros((1, 1), jnp.float32),
    }


# ----------------------------------------------------------------------------
# Forward pass (mirrors DistMultimodalRecurrentSimpleModule.forward).
# prev_action / mode are accepted but unused, exactly like the PyTorch forward.
# Only free row-major reshapes and a constant-folded pooling matrix are built
# outside the kernel -- no transpose / gather / matmul is dispatched here.
# ----------------------------------------------------------------------------
def forward(params, image, image_lens, instructions, prev_action=None, mode=None):
    B, T, C, H, W = image.shape
    L = instructions.shape[1]

    x_flat = image.reshape(B * T, C * H * W)                 # free reshape (b-major)
    lens_i = image_lens.astype(jnp.int32).reshape(B, 1)      # int32 mask lengths
    tok_flat = instructions.astype(jnp.int32).reshape(B * L, 1)

    # Constant mean-pool matrix: pool[b, b*L + l] = 1/L (data-independent,
    # constant-folded by XLA -> zero runtime dispatch).
    pool = (jnp.arange(B)[:, None] == (jnp.arange(B * L)[None, :] // L)
            ).astype(jnp.float32) / L

    return fused_forward(x_flat, lens_i, tok_flat, pool, params, B=B, T=T)


if __name__ == "__main__":
    B, T, C, H, W = 2, 8, 3, 16, 16
    De, Dh, Dt = 32, 32, 32
    vocab, tok_emb, L = 50, 16, 6

    key = jax.random.PRNGKey(0)
    k_img, k_tok, k_par = jax.random.split(key, 3)

    image = jax.random.normal(k_img, (B, T, C, H, W), jnp.float32)
    image_lens = jnp.array([8, 5], dtype=jnp.int32)
    instructions = jax.random.randint(k_tok, (B, L), 0, vocab)
    prev_action = jnp.zeros((B,), jnp.int32)   # unused by forward (as in PyTorch)

    params = init_params(k_par, C=C, H=H, W=W, De=De, Dh=Dh,
                         vocab=vocab, tok_emb=tok_emb, Dt=Dt)

    fwd = jax.jit(forward)
    out = fwd(params, image, image_lens, instructions, prev_action, None)
    out = jax.block_until_ready(out)
    assert out.shape == (B, 1)
    assert bool(jnp.all((out >= 0.0) & (out <= 1.0)))
    print("KERNEL_OK")
</pallas_src>

<mosaic_0001>
module attributes {stable_mosaic.version = 11 : i64} {
  func.func @_fused_forward_kernel(%arg0: i32, %arg1: memref<16x768xf32, #tpu.memory_space<vmem>>, %arg2: memref<2x1xi32, #tpu.memory_space<vmem>>, %arg3: memref<12x1xi32, #tpu.memory_space<vmem>>, %arg4: memref<2x12xf32, #tpu.memory_space<vmem>>, %arg5: memref<50x16xf32, #tpu.memory_space<vmem>>, %arg6: memref<768x32xf32, #tpu.memory_space<vmem>>, %arg7: memref<1x32xf32, #tpu.memory_space<vmem>>, %arg8: memref<32x32xf32, #tpu.memory_space<vmem>>, %arg9: memref<32x32xf32, #tpu.memory_space<vmem>>, %arg10: memref<1x32xf32, #tpu.memory_space<vmem>>, %arg11: memref<16x32xf32, #tpu.memory_space<vmem>>, %arg12: memref<1x32xf32, #tpu.memory_space<vmem>>, %arg13: memref<64x128xf32, #tpu.memory_space<vmem>>, %arg14: memref<1x128xf32, #tpu.memory_space<vmem>>, %arg15: memref<1x128xf32, #tpu.memory_space<vmem>>, %arg16: memref<1x1xf32, #tpu.memory_space<vmem>>, %arg17: memref<2x1xf32, #tpu.memory_space<vmem>>, %arg18: memref<16x32xf32, #tpu.memory_space<vmem>>) attributes {dimension_semantics = [#tpu.dimension_semantics<arbitrary>], iteration_bounds = array<i64: 1>, scalar_prefetch = 0 : i64, scratch_operands = 1 : i64, tpu.core_type = #tpu.core_type<tc>, window_params = [{pipeline_mode = #tpu.pipeline_mode<synchronous>, transform_indices = @transform_0, window_bounds = array<i64: 16, 768>}, {pipeline_mode = #tpu.pipeline_mode<synchronous>, transform_indices = @transform_1, window_bounds = array<i64: 2, 1>}, {pipeline_mode = #tpu.pipeline_mode<synchronous>, transform_indices = @transform_2, window_bounds = array<i64: 12, 1>}, {pipeline_mode = #tpu.pipeline_mode<synchronous>, transform_indices = @transform_3, window_bounds = array<i64: 2, 12>}, {pipeline_mode = #tpu.pipeline_mode<synchronous>, transform_indices = @transform_4, window_bounds = array<i64: 50, 16>}, {pipeline_mode = #tpu.pipeline_mode<synchronous>, transform_indices = @transform_5, window_bounds = array<i64: 768, 32>}, {pipeline_mode = #tpu.pipeline_mode<synchronous>, transform_indices = @transform_6, window_bounds = array<i64: 1, 32>}, {pipeline_mode = #tpu.pipeline_mode<synchronous>, transform_indices = @transform_7, window_bounds = array<i64: 32, 32>}, {pipeline_mode = #tpu.pipeline_mode<synchronous>, transform_indices = @transform_8, window_bounds = array<i64: 32, 32>}, {pipeline_mode = #tpu.pipeline_mode<synchronous>, transform_indices = @transform_9, window_bounds = array<i64: 1, 32>}, {pipeline_mode = #tpu.pipeline_mode<synchronous>, transform_indices = @transform_10, window_bounds = array<i64: 16, 32>}, {pipeline_mode = #tpu.pipeline_mode<synchronous>, transform_indices = @transform_11, window_bounds = array<i64: 1, 32>}, {pipeline_mode = #tpu.pipeline_mode<synchronous>, transform_indices = @transform_12, window_bounds = array<i64: 64, 128>}, {pipeline_mode = #tpu.pipeline_mode<synchronous>, transform_indices = @transform_13, window_bounds = array<i64: 1, 128>}, {pipeline_mode = #tpu.pipeline_mode<synchronous>, transform_indices = @transform_14, window_bounds = array<i64: 1, 128>}, {pipeline_mode = #tpu.pipeline_mode<synchronous>, transform_indices = @transform_15, window_bounds = array<i64: 1, 1>}, {pipeline_mode = #tpu.pipeline_mode<synchronous>, transform_indices = @transform_16, window_bounds = array<i64: 2, 1>}]} {
    %c0 = arith.constant 0 : index
    %c0_0 = arith.constant 0 : index
    %0 = vector.load %arg1[%c0, %c0_0] : memref<16x768xf32, #tpu.memory_space<vmem>>, vector<16x768xf32>
    %c0_1 = arith.constant 0 : index
    %c0_2 = arith.constant 0 : index
    %1 = vector.load %arg6[%c0_1, %c0_2] : memref<768x32xf32, #tpu.memory_space<vmem>>, vector<768x32xf32>
    %cst = arith.constant dense<0.000000e+00> : vector<16x32xf32>
    %2 = tpu.matmul %0, %1, %cst {dimension_numbers = #tpu.dot_dimension_numbers<[1], [0], [0], [1], [0, 0, 1, 1], [], []>} : vector<16x768xf32>, vector<768x32xf32>, vector<16x32xf32> -> vector<16x32xf32>
    %c0_3 = arith.constant 0 : index
    %c0_4 = arith.constant 0 : index
    %3 = vector.load %arg7[%c0_3, %c0_4] : memref<1x32xf32, #tpu.memory_space<vmem>>, vector<1x32xf32>
    %4 = vector.broadcast %3 : vector<1x32xf32> to vector<16x32xf32>
    %5 = arith.addf %2, %4 : vector<16x32xf32>
    %cst_5 = arith.constant 0.000000e+00 : f32
    %6 = vector.broadcast %cst_5 : f32 to vector<16x32xf32>
    %7 = arith.maximumf %5, %6 : vector<16x32xf32>
    %c0_6 = arith.constant 0 : index
    %c0_7 = arith.constant 0 : index
    %8 = vector.load %arg8[%c0_6, %c0_7] : memref<32x32xf32, #tpu.memory_space<vmem>>, vector<32x32xf32>
    %cst_8 = arith.constant dense<0.000000e+00> : vector<16x32xf32>
    %9 = tpu.matmul %7, %8, %cst_8 {dimension_numbers = #tpu.dot_dimension_numbers<[1], [0], [0], [1], [0, 0, 1, 1], [], []>} : vector<16x32xf32>, vector<32x32xf32>, vector<16x32xf32> -> vector<16x32xf32>
    %c0_9 = arith.constant 0 : index
    %c0_10 = arith.constant 0 : index
    %10 = vector.load %arg10[%c0_9, %c0_10] : memref<1x32xf32, #tpu.memory_space<vmem>>, vector<1x32xf32>
    %11 = vector.broadcast %10 : vector<1x32xf32> to vector<16x32xf32>
    %12 = arith.addf %9, %11 : vector<16x32xf32>
    %c0_11 = arith.constant 0 : index
    %c0_12 = arith.constant 0 : index
    %13 = vector.load %arg18[%c0_11, %c0_12] : memref<16x32xf32, #tpu.memory_space<vmem>>, vector<16x32xf32>
    tpu.vector_store %arg18[%c0_11, %c0_12], %12 {strides = array<i32>} : memref<16x32xf32, #tpu.memory_space<vmem>>, vector<16x32xf32>,
    %c0_13 = arith.constant 0 : index
    %c0_14 = arith.constant 0 : index
    %14 = vector.load %arg9[%c0_13, %c0_14] : memref<32x32xf32, #tpu.memory_space<vmem>>, vector<32x32xf32>
    %c0_15 = arith.constant 0 : index
    %c0_16 = arith.constant 0 : index
    %15 = vector.load %arg2[%c0_15, %c0_16] : memref<2x1xi32, #tpu.memory_space<vmem>>, vector<2x1xi32>
    %cst_17 = arith.constant 0.000000e+00 : f32
    %16 = vector.broadcast %cst_17 : f32 to vector<2x32xf32>
    %c0_i32 = arith.constant 0 : i32
    %17 = arith.index_cast %c0_i32 : i32 to index
    %c0_18 = arith.constant 0 : index
    %18 = tpu.strided_load %arg18[%17, %c0_18] {strides = array<i32: 8, 1>} : memref<16x32xf32, #tpu.memory_space<vmem>>, vector<2x32xf32>
    %cst_19 = arith.constant dense<0.000000e+00> : vector<2x32xf32>
    %19 = tpu.matmul %16, %14, %cst_19 {dimension_numbers = #tpu.dot_dimension_numbers<[1], [0], [0], [1], [0, 0, 1, 1], [], []>} : vector<2x32xf32>, vector<32x32xf32>, vector<2x32xf32> -> vector<2x32xf32>
    %20 = arith.addf %18, %19 : vector<2x32xf32>
    %21 = math.tanh %20 : vector<2x32xf32>
    %22 = vector.broadcast %c0_i32 : i32 to vector<2x1xi32>
    %23 = arith.cmpi slt, %22, %15 : vector<2x1xi32>
    %24 = vector.shape_cast %23 : vector<2x1xi1> to vector<2x1xi1>
    %25 = vector.broadcast %24 : vector<2x1xi1> to vector<2x32xi1>
    %26 = arith.select %25, %21, %16 : vector<2x32xi1>, vector<2x32xf32>
    %c1_i32 = arith.constant 1 : i32
    %27 = arith.index_cast %c1_i32 : i32 to index
    %c0_20 = arith.constant 0 : index
    %28 = tpu.strided_load %arg18[%27, %c0_20] {strides = array<i32: 8, 1>} : memref<16x32xf32, #tpu.memory_space<vmem>>, vector<2x32xf32>
    %cst_21 = arith.constant dense<0.000000e+00> : vector<2x32xf32>
    %29 = tpu.matmul %26, %14, %cst_21 {dimension_numbers = #tpu.dot_dimension_numbers<[1], [0], [0], [1], [0, 0, 1, 1], [], []>} : vector<2x32xf32>, vector<32x32xf32>, vector<2x32xf32> -> vector<2x32xf32>
    %30 = arith.addf %28, %29 : vector<2x32xf32>
    %31 = math.tanh %30 : vector<2x32xf32>
    %32 = vector.broadcast %c1_i32 : i32 to vector<2x1xi32>
    %33 = arith.cmpi slt, %32, %15 : vector<2x1xi32>
    %34 = vector.shape_cast %33 : vector<2x1xi1> to vector<2x1xi1>
    %35 = vector.broadcast %34 : vector<2x1xi1> to vector<2x32xi1>
    %36 = arith.select %35, %31, %26 : vector<2x32xi1>, vector<2x32xf32>
    %c2_i32 = arith.constant 2 : i32
    %37 = arith.index_cast %c2_i32 : i32 to index
    %c0_22 = arith.constant 0 : index
    %38 = tpu.strided_load %arg18[%37, %c0_22] {strides = array<i32: 8, 1>} : memref<16x32xf32, #tpu.memory_space<vmem>>, vector<2x32xf32>
    %cst_23 = arith.constant dense<0.000000e+00> : vector<2x32xf32>
    %39 = tpu.matmul %36, %14, %cst_23 {dimension_numbers = #tpu.dot_dimension_numbers<[1], [0], [0], [1], [0, 0, 1, 1], [], []>} : vector<2x32xf32>, vector<32x32xf32>, vector<2x32xf32> -> vector<2x32xf32>
    %40 = arith.addf %38, %39 : vector<2x32xf32>
    %41 = math.tanh %40 : vector<2x32xf32>
    %42 = vector.broadcast %c2_i32 : i32 to vector<2x1xi32>
    %43 = arith.cmpi slt, %42, %15 : vector<2x1xi32>
    %44 = vector.shape_cast %43 : vector<2x1xi1> to vector<2x1xi1>
    %45 = vector.broadcast %44 : vector<2x1xi1> to vector<2x32xi1>
    %46 = arith.select %45, %41, %36 : vector<2x32xi1>, vector<2x32xf32>
    %c3_i32 = arith.constant 3 : i32
    %47 = arith.index_cast %c3_i32 : i32 to index
    %c0_24 = arith.constant 0 : index
    %48 = tpu.strided_load %arg18[%47, %c0_24] {strides = array<i32: 8, 1>} : memref<16x32xf32, #tpu.memory_space<vmem>>, vector<2x32xf32>
    %cst_25 = arith.constant dense<0.000000e+00> : vector<2x32xf32>
    %49 = tpu.matmul %46, %14, %cst_25 {dimension_numbers = #tpu.dot_dimension_numbers<[1], [0], [0], [1], [0, 0, 1, 1], [], []>} : vector<2x32xf32>, vector<32x32xf32>, vector<2x32xf32> -> vector<2x32xf32>
    %50 = arith.addf %48, %49 : vector<2x32xf32>
    %51 = math.tanh %50 : vector<2x32xf32>
    %52 = vector.broadcast %c3_i32 : i32 to vector<2x1xi32>
    %53 = arith.cmpi slt, %52, %15 : vector<2x1xi32>
    %54 = vector.shape_cast %53 : vector<2x1xi1> to vector<2x1xi1>
    %55 = vector.broadcast %54 : vector<2x1xi1> to vector<2x32xi1>
    %56 = arith.select %55, %51, %46 : vector<2x32xi1>, vector<2x32xf32>
    %c4_i32 = arith.constant 4 : i32
    %57 = arith.index_cast %c4_i32 : i32 to index
    %c0_26 = arith.constant 0 : index
    %58 = tpu.strided_load %arg18[%57, %c0_26] {strides = array<i32: 8, 1>} : memref<16x32xf32, #tpu.memory_space<vmem>>, vector<2x32xf32>
    %cst_27 = arith.constant dense<0.000000e+00> : vector<2x32xf32>
    %59 = tpu.matmul %56, %14, %cst_27 {dimension_numbers = #tpu.dot_dimension_numbers<[1], [0], [0], [1], [0, 0, 1, 1], [], []>} : vector<2x32xf32>, vector<32x32xf32>, vector<2x32xf32> -> vector<2x32xf32>
    %60 = arith.addf %58, %59 : vector<2x32xf32>
    %61 = math.tanh %60 : vector<2x32xf32>
    %62 = vector.broadcast %c4_i32 : i32 to vector<2x1xi32>
    %63 = arith.cmpi slt, %62, %15 : vector<2x1xi32>
    %64 = vector.shape_cast %63 : vector<2x1xi1> to vector<2x1xi1>
    %65 = vector.broadcast %64 : vector<2x1xi1> to vector<2x32xi1>
    %66 = arith.select %65, %61, %56 : vector<2x32xi1>, vector<2x32xf32>
    %c5_i32 = arith.constant 5 : i32
    %67 = arith.index_cast %c5_i32 : i32 to index
    %c0_28 = arith.constant 0 : index
    %68 = tpu.strided_load %arg18[%67, %c0_28] {strides = array<i32: 8, 1>} : memref<16x32xf32, #tpu.memory_space<vmem>>, vector<2x32xf32>
    %cst_29 = arith.constant dense<0.000000e+00> : vector<2x32xf32>
    %69 = tpu.matmul %66, %14, %cst_29 {dimension_numbers = #tpu.dot_dimension_numbers<[1], [0], [0], [1], [0, 0, 1, 1], [], []>} : vector<2x32xf32>, vector<32x32xf32>, vector<2x32xf32> -> vector<2x32xf32>
    %70 = arith.addf %68, %69 : vector<2x32xf32>
    %71 = math.tanh %70 : vector<2x32xf32>
    %72 = vector.broadcast %c5_i32 : i32 to vector<2x1xi32>
    %73 = arith.cmpi slt, %72, %15 : vector<2x1xi32>
    %74 = vector.shape_cast %73 : vector<2x1xi1> to vector<2x1xi1>
    %75 = vector.broadcast %74 : vector<2x1xi1> to vector<2x32xi1>
    %76 = arith.select %75, %71, %66 : vector<2x32xi1>, vector<2x32xf32>
    %c6_i32 = arith.constant 6 : i32
    %77 = arith.index_cast %c6_i32 : i32 to index
    %c0_30 = arith.constant 0 : index
    %78 = tpu.strided_load %arg18[%77, %c0_30] {strides = array<i32: 8, 1>} : memref<16x32xf32, #tpu.memory_space<vmem>>, vector<2x32xf32>
    %cst_31 = arith.constant dense<0.000000e+00> : vector<2x32xf32>
    %79 = tpu.matmul %76, %14, %cst_31 {dimension_numbers = #tpu.dot_dimension_numbers<[1], [0], [0], [1], [0, 0, 1, 1], [], []>} : vector<2x32xf32>, vector<32x32xf32>, vector<2x32xf32> -> vector<2x32xf32>
    %80 = arith.addf %78, %79 : vector<2x32xf32>
    %81 = math.tanh %80 : vector<2x32xf32>
    %82 = vector.broadcast %c6_i32 : i32 to vector<2x1xi32>
    %83 = arith.cmpi slt, %82, %15 : vector<2x1xi32>
    %84 = vector.shape_cast %83 : vector<2x1xi1> to vector<2x1xi1>
    %85 = vector.broadcast %84 : vector<2x1xi1> to vector<2x32xi1>
    %86 = arith.select %85, %81, %76 : vector<2x32xi1>, vector<2x32xf32>
    %c7_i32 = arith.constant 7 : i32
    %87 = arith.index_cast %c7_i32 : i32 to index
    %c0_32 = arith.constant 0 : index
    %88 = tpu.strided_load %arg18[%87, %c0_32] {strides = array<i32: 8, 1>} : memref<16x32xf32, #tpu.memory_space<vmem>>, vector<2x32xf32>
    %cst_33 = arith.constant dense<0.000000e+00> : vector<2x32xf32>
    %89 = tpu.matmul %86, %14, %cst_33 {dimension_numbers = #tpu.dot_dimension_numbers<[1], [0], [0], [1], [0, 0, 1, 1], [], []>} : vector<2x32xf32>, vector<32x32xf32>, vector<2x32xf32> -> vector<2x32xf32>
    %90 = arith.addf %88, %89 : vector<2x32xf32>
    %91 = math.tanh %90 : vector<2x32xf32>
    %92 = vector.broadcast %c7_i32 : i32 to vector<2x1xi32>
    %93 = arith.cmpi slt, %92, %15 : vector<2x1xi32>
    %94 = vector.shape_cast %93 : vector<2x1xi1> to vector<2x1xi1>
    %95 = vector.broadcast %94 : vector<2x1xi1> to vector<2x32xi1>
    %96 = arith.select %95, %91, %86 : vector<2x32xi1>, vector<2x32xf32>
    %c8_i32 = arith.constant 8 : i32
    %97 = tpu.iota {dimensions = array<i32: 1>} : vector<12x50xi32>
    %c0_34 = arith.constant 0 : index
    %c0_35 = arith.constant 0 : index
    %98 = vector.load %arg3[%c0_34, %c0_35] : memref<12x1xi32, #tpu.memory_space<vmem>>, vector<12x1xi32>
    %99 = vector.broadcast %98 : vector<12x1xi32> to vector<12x50xi32>
    %100 = arith.cmpi eq, %99, %97 : vector<12x50xi32>
    %101 = arith.extui %100 : vector<12x50xi1> to vector<12x50xi32>
    %102 = arith.sitofp %101 : vector<12x50xi32> to vector<12x50xf32>
    %c0_36 = arith.constant 0 : index
    %c0_37 = arith.constant 0 : index
    %103 = vector.load %arg5[%c0_36, %c0_37] : memref<50x16xf32, #tpu.memory_space<vmem>>, vector<50x16xf32>
    %cst_38 = arith.constant dense<0.000000e+00> : vector<12x16xf32>
    %104 = tpu.matmul %102, %103, %cst_38 {dimension_numbers = #tpu.dot_dimension_numbers<[1], [0], [0], [1], [0, 0, 1, 1], [], []>} : vector<12x50xf32>, vector<50x16xf32>, vector<12x16xf32> -> vector<12x16xf32>
    %c0_39 = arith.constant 0 : index
    %c0_40 = arith.constant 0 : index
    %105 = vector.load %arg4[%c0_39, %c0_40] : memref<2x12xf32, #tpu.memory_space<vmem>>, vector<2x12xf32>
    %cst_41 = arith.constant dense<0.000000e+00> : vector<2x16xf32>
    %106 = tpu.matmul %105, %104, %cst_41 {dimension_numbers = #tpu.dot_dimension_numbers<[1], [0], [0], [1], [0, 0, 1, 1], [], []>} : vector<2x12xf32>, vector<12x16xf32>, vector<2x16xf32> -> vector<2x16xf32>
    %c0_42 = arith.constant 0 : index
    %c0_43 = arith.constant 0 : index
    %107 = vector.load %arg11[%c0_42, %c0_43] : memref<16x32xf32, #tpu.memory_space<vmem>>, vector<16x32xf32>
    %cst_44 = arith.constant dense<0.000000e+00> : vector<2x32xf32>
    %108 = tpu.matmul %106, %107, %cst_44 {dimension_numbers = #tpu.dot_dimension_numbers<[1], [0], [0], [1], [0, 0, 1, 1], [], []>} : vector<2x16xf32>, vector<16x32xf32>, vector<2x32xf32> -> vector<2x32xf32>
    %c0_45 = arith.constant 0 : index
    %c0_46 = arith.constant 0 : index
    %109 = vector.load %arg12[%c0_45, %c0_46] : memref<1x32xf32, #tpu.memory_space<vmem>>, vector<1x32xf32>
    %110 = vector.broadcast %109 : vector<1x32xf32> to vector<2x32xf32>
    %111 = arith.addf %108, %110 : vector<2x32xf32>
    %cst_47 = arith.constant 0.000000e+00 : f32
    %112 = vector.broadcast %cst_47 : f32 to vector<2x32xf32>
    %113 = arith.maximumf %111, %112 : vector<2x32xf32>
    %114 = tpu.concatenate %96, %113 in 1 : vector<2x32xf32>, vector<2x32xf32> -> vector<2x64xf32>
    %c0_48 = arith.constant 0 : index
    %c0_49 = arith.constant 0 : index
    %115 = vector.load %arg13[%c0_48, %c0_49] : memref<64x128xf32, #tpu.memory_space<vmem>>, vector<64x128xf32>
    %cst_50 = arith.constant dense<0.000000e+00> : vector<2x128xf32>
    %116 = tpu.matmul %114, %115, %cst_50 {dimension_numbers = #tpu.dot_dimension_numbers<[1], [0], [0], [1], [0, 0, 1, 1], [], []>} : vector<2x64xf32>, vector<64x128xf32>, vector<2x128xf32> -> vector<2x128xf32>
    %c0_51 = arith.constant 0 : index
    %c0_52 = arith.constant 0 : index
    %117 = vector.load %arg14[%c0_51, %c0_52] : memref<1x128xf32, #tpu.memory_space<vmem>>, vector<1x128xf32>
    %118 = vector.broadcast %117 : vector<1x128xf32> to vector<2x128xf32>
    %119 = arith.addf %116, %118 : vector<2x128xf32>
    %cst_53 = arith.constant 0.000000e+00 : f32
    %120 = vector.broadcast %cst_53 : f32 to vector<2x128xf32>
    %121 = arith.maximumf %119, %120 : vector<2x128xf32>
    %c0_54 = arith.constant 0 : index
    %c0_55 = arith.constant 0 : index
    %122 = vector.load %arg15[%c0_54, %c0_55] : memref<1x128xf32, #tpu.memory_space<vmem>>, vector<1x128xf32>
    %123 = vector.broadcast %122 : vector<1x128xf32> to vector<2x128xf32>
    %124 = arith.mulf %121, %123 : vector<2x128xf32>
    %cst_56 = arith.constant dense<0.000000e+00> : vector<2xf32>
    %125 = vector.multi_reduction <add>, %124, %cst_56 [1] : vector<2x128xf32> to vector<2xf32>
    %126 = vector.shape_cast %125 : vector<2xf32> to vector<2x1xf32>
    %c0_57 = arith.constant 0 : index
    %c0_58 = arith.constant 0 : index
    %127 = vector.load %arg16[%c0_57, %c0_58] : memref<1x1xf32, #tpu.memory_space<vmem>>, vector<1x1xf32>
    %128 = vector.broadcast %127 : vector<1x1xf32> to vector<2x1xf32>
    %129 = arith.addf %126, %128 : vector<2x1xf32>
    %cst_59 = arith.constant 0.000000e+00 : f32
    %130 = vector.broadcast %cst_59 : f32 to vector<2x1xf32>
    %131 = arith.subf %130, %129 : vector<2x1xf32>
    %132 = math.exp %131 : vector<2x1xf32>
    %cst_60 = arith.constant 1.000000e+00 : f32
    %133 = vector.broadcast %cst_60 : f32 to vector<2x1xf32>
    %134 = arith.addf %133, %132 : vector<2x1xf32>
    %cst_61 = arith.constant 1.000000e+00 : f32
    %135 = vector.broadcast %cst_61 : f32 to vector<2x1xf32>
    %136 = arith.divf %135, %134 : vector<2x1xf32>
    %c0_62 = arith.constant 0 : index
    %c0_63 = arith.constant 0 : index
    %137 = vector.load %arg17[%c0_62, %c0_63] : memref<2x1xf32, #tpu.memory_space<vmem>>, vector<2x1xf32>
    tpu.vector_store %arg17[%c0_62, %c0_63], %136 {strides = array<i32>} : memref<2x1xf32, #tpu.memory_space<vmem>>, vector<2x1xf32>,
    return
  }
  func.func @transform_0(%arg0: i32) -> (i32, i32) {
    %c0_i32 = arith.constant 0 : i32
    %c0_i32_0 = arith.constant 0 : i32
    %c0_i32_1 = arith.constant 0 : i32
    return %c0_i32, %c0_i32_0 : i32, i32
  }
  func.func @transform_1(%arg0: i32) -> (i32, i32) {
    %c0_i32 = arith.constant 0 : i32
    %c0_i32_0 = arith.constant 0 : i32
    %c0_i32_1 = arith.constant 0 : i32
    return %c0_i32, %c0_i32_0 : i32, i32
  }
  func.func @transform_2(%arg0: i32) -> (i32, i32) {
    %c0_i32 = arith.constant 0 : i32
    %c0_i32_0 = arith.constant 0 : i32
    %c0_i32_1 = arith.constant 0 : i32
    return %c0_i32, %c0_i32_0 : i32, i32
  }
  func.func @transform_3(%arg0: i32) -> (i32, i32) {
    %c0_i32 = arith.constant 0 : i32
    %c0_i32_0 = arith.constant 0 : i32
    %c0_i32_1 = arith.constant 0 : i32
    return %c0_i32, %c0_i32_0 : i32, i32
  }
  func.func @transform_4(%arg0: i32) -> (i32, i32) {
    %c0_i32 = arith.constant 0 : i32
    %c0_i32_0 = arith.constant 0 : i32
    %c0_i32_1 = arith.constant 0 : i32
    return %c0_i32, %c0_i32_0 : i32, i32
  }
  func.func @transform_5(%arg0: i32) -> (i32, i32) {
    %c0_i32 = arith.constant 0 : i32
    %c0_i32_0 = arith.constant 0 : i32
    %c0_i32_1 = arith.constant 0 : i32
    return %c0_i32, %c0_i32_0 : i32, i32
  }
  func.func @transform_6(%arg0: i32) -> (i32, i32) {
    %c0_i32 = arith.constant 0 : i32
    %c0_i32_0 = arith.constant 0 : i32
    %c0_i32_1 = arith.constant 0 : i32
    return %c0_i32, %c0_i32_0 : i32, i32
  }
  func.func @transform_7(%arg0: i32) -> (i32, i32) {
    %c0_i32 = arith.constant 0 : i32
    %c0_i32_0 = arith.constant 0 : i32
    %c0_i32_1 = arith.constant 0 : i32
    return %c0_i32, %c0_i32_0 : i32, i32
  }
  func.func @transform_8(%arg0: i32) -> (i32, i32) {
    %c0_i32 = arith.constant 0 : i32
    %c0_i32_0 = arith.constant 0 : i32
    %c0_i32_1 = arith.constant 0 : i32
    return %c0_i32, %c0_i32_0 : i32, i32
  }
  func.func @transform_9(%arg0: i32) -> (i32, i32) {
    %c0_i32 = arith.constant 0 : i32
    %c0_i32_0 = arith.constant 0 : i32
    %c0_i32_1 = arith.constant 0 : i32
    return %c0_i32, %c0_i32_0 : i32, i32
  }
  func.func @transform_10(%arg0: i32) -> (i32, i32) {
    %c0_i32 = arith.constant 0 : i32
    %c0_i32_0 = arith.constant 0 : i32
    %c0_i32_1 = arith.constant 0 : i32
    return %c0_i32, %c0_i32_0 : i32, i32
  }
  func.func @transform_11(%arg0: i32) -> (i32, i32) {
    %c0_i32 = arith.constant 0 : i32
    %c0_i32_0 = arith.constant 0 : i32
    %c0_i32_1 = arith.constant 0 : i32
    return %c0_i32, %c0_i32_0 : i32, i32
  }
  func.func @transform_12(%arg0: i32) -> (i32, i32) {
    %c0_i32 = arith.constant 0 : i32
    %c0_i32_0 = arith.constant 0 : i32
    %c0_i32_1 = arith.constant 0 : i32
    return %c0_i32, %c0_i32_0 : i32, i32
  }
  func.func @transform_13(%arg0: i32) -> (i32, i32) {
    %c0_i32 = arith.constant 0 : i32
    %c0_i32_0 = arith.constant 0 : i32
    %c0_i32_1 = arith.constant 0 : i32
    return %c0_i32, %c0_i32_0 : i32, i32
  }
  func.func @transform_14(%arg0: i32) -> (i32, i32) {
    %c0_i32 = arith.constant 0 : i32
    %c0_i32_0 = arith.constant 0 : i32
    %c0_i32_1 = arith.constant 0 : i32
    return %c0_i32, %c0_i32_0 : i32, i32
  }
  func.func @transform_15(%arg0: i32) -> (i32, i32) {
    %c0_i32 = arith.constant 0 : i32
    %c0_i32_0 = arith.constant 0 : i32
    %c0_i32_1 = arith.constant 0 : i32
    return %c0_i32, %c0_i32_0 : i32, i32
  }
  func.func @transform_16(%arg0: i32) -> (i32, i32) {
    %c0_i32 = arith.constant 0 : i32
    %c0_i32_0 = arith.constant 0 : i32
    %c0_i32_1 = arith.constant 0 : i32
    return %c0_i32, %c0_i32_0 : i32, i32
  }
}

</mosaic_0001>

<bundles_post_ra>
// kernel: forward.1
= control target key start
LH: loop header
LB: loop body
LE: loop exit
PB: predicated region body
PF: predicated region fallthrough
CT: control target
= control target key end

     0   :  { %vm2135_vm0 = vmmov 0   ;;  %vm408_vm5 = vcmask 261120   ;;  %s2761_s5 = inlined_call_operand.vmem [shape: f32[768,32], index: 5, kind: input, shape index: {}]   ;;  %s2762_s0 = inlined_call_operand.vmem [shape: f32[16,768], index: 0, kind: input, shape index: {}]   ;;  %s2763_s7 = inlined_call_operand.vmem [shape: f32[32,32], index: 7, kind: input, shape index: {}]   ;;  %s2764_s8 = inlined_call_operand.vmem [shape: f32[32,32], index: 8, kind: input, shape index: {}]   ;;  %s2765_s1 = inlined_call_operand.vmem [shape: s32[2,1], index: 1, kind: input, shape index: {}]   ;;  %s2766_s2 = inlined_call_operand.vmem [shape: s32[12,1], index: 2, kind: input, shape index: {}]   ;;  %s2767_s6 = inlined_call_operand.vmem [shape: f32[1,32], index: 6, kind: input, shape index: {}]   ;;  %s2768_s9 = inlined_call_operand.vmem [shape: f32[1,32], index: 9, kind: input, shape index: {}]   ;;  %s2769_s4 = inlined_call_operand.vmem [shape: f32[50,16], index: 4, kind: input, shape index: {}]   ;;  %s2770_s3 = inlined_call_operand.vmem [shape: f32[2,12], index: 3, kind: input, shape index: {}]   ;;  %s2771_s10 = inlined_call_operand.vmem [shape: f32[16,32], index: 10, kind: input, shape index: {}]   ;;  %s2772_s12 = inlined_call_operand.vmem [shape: f32[64,128], index: 12, kind: input, shape index: {}]   ;;  %s2773_s11 = inlined_call_operand.vmem [shape: f32[1,32], index: 11, kind: input, shape index: {}]   ;;  %s2774_s15 = inlined_call_operand.<no memory space> [shape: f32[1,1], index: 15, kind: input, shape index: {}]   ;;  %s2775_s13 = inlined_call_operand.vmem [shape: f32[1,128], index: 13, kind: input, shape index: {}]   ;;  %s2776_s14 = inlined_call_operand.vmem [shape: f32[1,128], index: 14, kind: input, shape index: {}]   ;;  %s2777_s16 = inlined_call_operand.vmem [shape: f32[2,1], index: 16, kind: output, shape index: {}]  }
   0x1   :  { %2779 = sst [smem:[#allocation4_spill]] %s2761_s5 }
   0x2   :  { %s2780_s23 = sld [smem:[#allocation4_spill]] }
   0x8   :  { %v83_v0 = vld [vmem:[%s2780_s23 + $0x80] sm:$0xff]  ;;  %v84_v1 = vld [vmem:[%s2780_s23 + $0x88] sm:$0xff]  ;;  %v85_v11 = vld [vmem:[%s2780_s23 + $0x90] sm:$0xff] }
   0x9   :  { %v67_v2 = vld [vmem:[%s2780_s23] sm:$0xff]  ;;  %v1923_v3 = vpack.c.bf16 %v84_v1, %v83_v0  ;;  %v68_v4 = vld [vmem:[%s2780_s23 + $0x8] sm:$0xff]  ;;  %v86_v13 = vld [vmem:[%s2780_s23 + $0x98] sm:$0xff] }
   0xa   :  { %v115_v5 = vld [vmem:[%s2780_s23 + $0x180] sm:$0xff]  ;;  %v116_v6 = vld [vmem:[%s2780_s23 + $0x188] sm:$0xff]  ;;  %v1925_v7 = vpack.c.bf16 %v68_v4, %v67_v2  ;;  %v69_v14 = vld [vmem:[%s2780_s23 + $0x10] sm:$0xff]  ;;  %v1927_v16 = vpack.c.bf16 %v86_v13, %v85_v11 }
   0xb   :  { %v1955_v8 = vpack.c.bf16 %v116_v6, %v115_v5  ;;  %v99_v9 = vld [vmem:[%s2780_s23 + $0x100] sm:$0xff]  ;;  %v100_v10 = vld [vmem:[%s2780_s23 + $0x108] sm:$0xff]  ;;  %1924 = vmatprep.subr.bf16.mxu0 %v1923_v3  ;;  %v70_v15 = vld [vmem:[%s2780_s23 + $0x18] sm:$0xff] }
   0xc   :  { %v1957_v12 = vpack.c.bf16 %v100_v10, %v99_v9  ;;  %1926 = vmatpush3.bf16.msra.mxu0 %v1925_v7  ;;  %v1929_v17 = vpack.c.bf16 %v70_v15, %v69_v14  ;;  %v117_v18 = vld [vmem:[%s2780_s23 + $0x190] sm:$0xff]  ;;  %v118_v19 = vld [vmem:[%s2780_s23 + $0x198] sm:$0xff]  ;;  %v87_v23 = vld [vmem:[%s2780_s23 + $0xa0] sm:$0xff] }
   0xd   :  { %1956 = vmatprep.subr.bf16.mxu1 %v1955_v8  ;;  %v101_v20 = vld [vmem:[%s2780_s23 + $0x110] sm:$0xff]  ;;  %v1959_v21 = vpack.c.bf16 %v118_v19, %v117_v18  ;;  %v102_v22 = vld [vmem:[%s2780_s23 + $0x118] sm:$0xff]  ;;  %v88_v24 = vld [vmem:[%s2780_s23 + $0xa8] sm:$0xff]  ;;  %1928 = vmatprep.subr.bf16.mxu0 %v1927_v16 }
   0xe   :  { %1958 = vmatpush3.bf16.msra.mxu1 %v1957_v12  ;;  %v1961_v25 = vpack.c.bf16 %v102_v22, %v101_v20  ;;  %v1931_v26 = vpack.c.bf16 %v88_v24, %v87_v23  ;;  %v71_v27 = vld [vmem:[%s2780_s23 + $0x20] sm:$0xff]  ;;  %v72_v28 = vld [vmem:[%s2780_s23 + $0x28] sm:$0xff]  ;;  %v89_v35 = vld [vmem:[%s2780_s23 + $0xb0] sm:$0xff] }
   0xf   :  { %v119_v29 = vld [vmem:[%s2780_s23 + $0x1a0] sm:$0xff]  ;;  %1960 = vmatprep.subr.bf16.mxu1 %v1959_v21  ;;  %v120_v30 = vld [vmem:[%s2780_s23 + $0x1a8] sm:$0xff]  ;;  %v1933_v33 = vpack.c.bf16 %v72_v28, %v71_v27  ;;  %v90_v36 = vld [vmem:[%s2780_s23 + $0xb8] sm:$0xff] }
  0x10   :  { %v103_v31 = vld [vmem:[%s2780_s23 + $0x120] sm:$0xff]  ;;  %v104_v32 = vld [vmem:[%s2780_s23 + $0x128] sm:$0xff]  ;;  %1930 = vmatpush3.bf16.msra.mxu0 %v1929_v17  ;;  %v1963_v34 = vpack.c.bf16 %v120_v30, %v119_v29  ;;  %v73_v37 = vld [vmem:[%s2780_s23 + $0x30] sm:$0xff]  ;;  %v1935_v39 = vpack.c.bf16 %v90_v36, %v89_v35 }
  0x11   :  { %1932 = vmatprep.subr.bf16.mxu0 %v1931_v26  ;;  %v1965_v38 = vpack.c.bf16 %v104_v32, %v103_v31  ;;  %v74_v40 = vld [vmem:[%s2780_s23 + $0x38] sm:$0xff]  ;;  %v121_v41 = vld [vmem:[%s2780_s23 + $0x1b0] sm:$0xff]  ;;  %v91_v46 = vld [vmem:[%s2780_s23 + $0xc0] sm:$0xff] }
  0x12   :  { %1962 = vmatpush3.bf16.msra.mxu1 %v1961_v25  ;;  %v122_v42 = vld [vmem:[%s2780_s23 + $0x1b8] sm:$0xff]  ;;  %v105_v44 = vld [vmem:[%s2780_s23 + $0x130] sm:$0xff]  ;;  %v92_v47 = vld [vmem:[%s2780_s23 + $0xc8] sm:$0xff]  ;;  %v1937_v48 = vpack.c.bf16 %v74_v40, %v73_v37 }
  0x13   :  { %1964 = vmatprep.subr.bf16.mxu1 %v1963_v34  ;;  %v1967_v43 = vpack.c.bf16 %v122_v42, %v121_v41  ;;  %v106_v45 = vld [vmem:[%s2780_s23 + $0x138] sm:$0xff]  ;;  %v123_v49 = vld [vmem:[%s2780_s23 + $0x1c0] sm:$0xff]  ;;  %v124_v50 = vld [vmem:[%s2780_s23 + $0x1c8] sm:$0xff]  ;;  %v1939_v52 = vpack.c.bf16 %v92_v47, %v91_v46 }
  0x14   :  { %1934 = vmatpush3.bf16.msra.mxu0 %v1933_v33  ;;  %v1969_v51 = vpack.c.bf16 %v106_v45, %v105_v44  ;;  %v75_v53 = vld [vmem:[%s2780_s23 + $0x40] sm:$0xff]  ;;  %v76_v54 = vld [vmem:[%s2780_s23 + $0x48] sm:$0xff]  ;;  %v1971_v56 = vpack.c.bf16 %v124_v50, %v123_v49  ;;  %v93_v58 = vld [vmem:[%s2780_s23 + $0xd0] sm:$0xff] }
  0x15   :  { %1936 = vmatprep.subr.bf16.mxu0 %v1935_v39  ;;  %v107_v55 = vld [vmem:[%s2780_s23 + $0x140] sm:$0xff]  ;;  %v108_v57 = vld [vmem:[%s2780_s23 + $0x148] sm:$0xff]  ;;  %v94_v59 = vld [vmem:[%s2780_s23 + $0xd8] sm:$0xff]  ;;  %v1941_v62 = vpack.c.bf16 %v76_v54, %v75_v53 }
  0x16   :  { %1966 = vmatpush3.bf16.msra.mxu1 %v1965_v38  ;;  %v125_v60 = vld [vmem:[%s2780_s23 + $0x1d0] sm:$0xff]  ;;  %v126_v61 = vld [vmem:[%s2780_s23 + $0x1d8] sm:$0xff]  ;;  %v1973_v63 = vpack.c.bf16 %v108_v57, %v107_v55  ;;  %v1943_v0 = vpack.c.bf16 %v94_v59, %v93_v58  ;;  %v95_v6 = vld [vmem:[%s2780_s23 + $0xe0] sm:$0xff] }
  0x17   :  { %1968 = vmatprep.subr.bf16.mxu1 %v1967_v43  ;;  %v77_v1 = vld [vmem:[%s2780_s23 + $0x50] sm:$0xff]  ;;  %v78_v2 = vld [vmem:[%s2780_s23 + $0x58] sm:$0xff]  ;;  %v1975_v4 = vpack.c.bf16 %v126_v61, %v125_v60  ;;  %v96_v7 = vld [vmem:[%s2780_s23 + $0xe8] sm:$0xff] }
  0x18   :  { %1938 = vmatpush3.bf16.msra.mxu0 %v1937_v48  ;;  %v109_v3 = vld [vmem:[%s2780_s23 + $0x150] sm:$0xff]  ;;  %v110_v5 = vld [vmem:[%s2780_s23 + $0x158] sm:$0xff]  ;;  %v127_v8 = vld [vmem:[%s2780_s23 + $0x1e0] sm:$0xff]  ;;  %v1945_v10 = vpack.c.bf16 %v78_v2, %v77_v1  ;;  %v1947_v14 = vpack.c.bf16 %v96_v7, %v95_v6 }
  0x19   :  { %1940 = vmatprep.subr.bf16.mxu0 %v1939_v52  ;;  %v128_v9 = vld [vmem:[%s2780_s23 + $0x1e8] sm:$0xff]  ;;  %v79_v11 = vld [vmem:[%s2780_s23 + $0x60] sm:$0xff]  ;;  %v1977_v13 = vpack.c.bf16 %v110_v5, %v109_v3  ;;  %v97_v19 = vld [vmem:[%s2780_s23 + $0xf0] sm:$0xff] }
  0x1a   :  { %1970 = vmatpush3.bf16.msra.mxu1 %v1969_v51  ;;  %v56_v12 = vld [vmem:[%s2762_s0 + $0x8] sm:$0xff]  ;;  %v111_v16 = vld [vmem:[%s2780_s23 + $0x160] sm:$0xff]  ;;  %v1979_v18 = vpack.c.bf16 %v128_v9, %v127_v8  ;;  %v98_v20 = vld [vmem:[%s2780_s23 + $0xf8] sm:$0xff] }
  0x1b   :  { %1972 = vmatprep.subr.bf16.mxu1 %v1971_v56  ;;  %v80_v15 = vld [vmem:[%s2780_s23 + $0x68] sm:$0xff]  ;;  %234 = vmatprep.mubr.f32.mxu0 %v56_v12  ;;  %v58_v21 = vld [vmem:[%s2762_s0 + $0x18] sm:$0xff]  ;;  %v129_v22 = vld [vmem:[%s2780_s23 + $0x1f0] sm:$0xff]  ;;  %v1951_v26 = vpack.c.bf16 %v98_v20, %v97_v19 }
  0x1c   :  { %1942 = vmatpush3.bf16.msra.mxu0 %v1941_v62  ;;  %v112_v17 = vld [vmem:[%s2780_s23 + $0x168] sm:$0xff]  ;;  %v130_v23 = vld [vmem:[%s2780_s23 + $0x1f8] sm:$0xff]  ;;  %309 = vmatprep.mubr.f32.mxu1 %v58_v21  ;;  %v1949_v24 = vpack.c.bf16 %v80_v15, %v79_v11  ;;  %v81_v27 = vld [vmem:[%s2780_s23 + $0x70] sm:$0xff] }
  0x1d   :  { %1944 = vmatprep.subr.bf16.mxu0 %v1943_v0  ;;  %v1981_v25 = vpack.c.bf16 %v112_v17, %v111_v16  ;;  %v82_v28 = vld [vmem:[%s2780_s23 + $0x78] sm:$0xff]  ;;  %v113_v29 = vld [vmem:[%s2780_s23 + $0x170] sm:$0xff]  ;;  %v1983_v30 = vpack.c.bf16 %v130_v23, %v129_v22  ;;  %v147_v32 = vld [vmem:[%s2780_s23 + $0x280] sm:$0xff] }
  0x1e   :  { %1974 = vmatpush3.bf16.msra.mxu1 %v1973_v63  ;;  %v114_v31 = vld [vmem:[%s2780_s23 + $0x178] sm:$0xff]  ;;  %v148_v33 = vld [vmem:[%s2780_s23 + $0x288] sm:$0xff]  ;;  %v1953_v34 = vpack.c.bf16 %v82_v28, %v81_v27  ;;  %v131_v37 = vld [vmem:[%s2780_s23 + $0x200] sm:$0xff] }
  0x1f   :  { %1976 = vmatprep.subr.bf16.mxu1 %v1975_v4  ;;  %v1985_v35 = vpack.c.bf16 %v114_v31, %v113_v29  ;;  %v1987_v36 = vpack.c.bf16 %v148_v33, %v147_v32  ;;  %v132_v38 = vld [vmem:[%s2780_s23 + $0x208] sm:$0xff]  ;;  %v149_v39 = vld [vmem:[%s2780_s23 + $0x290] sm:$0xff]  ;;  %v150_v40 = vld [vmem:[%s2780_s23 + $0x298] sm:$0xff] }
  0x20   :  { %1946 = vmatpush3.bf16.msra.mxu0 %v1945_v10  ;;  %v55_v41 = vld [vmem:[%s2762_s0] sm:$0xff]  ;;  %v1989_v42 = vpack.c.bf16 %v132_v38, %v131_v37  ;;  %v57_v43 = vld [vmem:[%s2762_s0 + $0x10] sm:$0xff]  ;;  %v1991_v44 = vpack.c.bf16 %v150_v40, %v149_v39  ;;  %v134_v46 = vld [vmem:[%s2780_s23 + $0x218] sm:$0xff]  ;;  %v2134_v37 = vmov 0.0|0.0   ;;  %v2136_v40 = vmov 0.0  }
  0x21   :  { %1948 = vmatprep.subr.bf16.mxu0 %v1947_v14  ;;  %v133_v45 = vld [vmem:[%s2780_s23 + $0x210] sm:$0xff]  ;;  %v151_v47 = vld [vmem:[%s2780_s23 + $0x2a0] sm:$0xff]  ;;  %v152_v48 = vld [vmem:[%s2780_s23 + $0x2a8] sm:$0xff] }
  0x22   :  { %1978 = vmatpush3.bf16.msra.mxu1 %v1977_v13  ;;  %v62_v49 = vld [vmem:[%s2762_s0 + $0x38] sm:$0xff]  ;;  %v64_v50 = vld [vmem:[%s2762_s0 + $0x48] sm:$0xff]  ;;  %v1993_v51 = vpack.c.bf16 %v134_v46, %v133_v45  ;;  %v61_v52 = vld [vmem:[%s2762_s0 + $0x30] sm:$0xff]  ;;  %v1995_v53 = vpack.c.bf16 %v152_v48, %v151_v47 }
  0x23   :  { %1980 = vmatprep.subr.bf16.mxu1 %v1979_v18  ;;  %v135_v54 = vld [vmem:[%s2780_s23 + $0x220] sm:$0xff]  ;;  %v136_v55 = vld [vmem:[%s2780_s23 + $0x228] sm:$0xff]  ;;  %v153_v57 = vld [vmem:[%s2780_s23 + $0x2b0] sm:$0xff] }
  0x24   :  { %1950 = vmatpush3.bf16.msra.mxu0 %v1949_v24  ;;  %v63_v56 = vld [vmem:[%s2762_s0 + $0x40] sm:$0xff]  ;;  %v154_v58 = vld [vmem:[%s2780_s23 + $0x2b8] sm:$0xff]  ;;  %v60_v59 = vld [vmem:[%s2762_s0 + $0x28] sm:$0xff]  ;;  %v1997_v60 = vpack.c.bf16 %v136_v55, %v135_v54 }
  0x25   :  { %1952 = vmatprep.subr.bf16.mxu0 %v1951_v26  ;;  %v1999_v61 = vpack.c.bf16 %v154_v58, %v153_v57  ;;  %v137_v62 = vld [vmem:[%s2780_s23 + $0x230] sm:$0xff]  ;;  %v138_v63 = vld [vmem:[%s2780_s23 + $0x238] sm:$0xff]  ;;  %v155_v0 = vld [vmem:[%s2780_s23 + $0x2c0] sm:$0xff] }
  0x26   :  { %1982 = vmatpush3.bf16.msra.mxu1 %v1981_v25  ;;  %v156_v1 = vld [vmem:[%s2780_s23 + $0x2c8] sm:$0xff]  ;;  %v2001_v2 = vpack.c.bf16 %v138_v63, %v137_v62  ;;  %v139_v4 = vld [vmem:[%s2780_s23 + $0x240] sm:$0xff]  ;;  %v157_v6 = vld [vmem:[%s2780_s23 + $0x2d0] sm:$0xff] }
  0x27   :  { %1984 = vmatprep.subr.bf16.mxu1 %v1983_v30  ;;  %v2003_v3 = vpack.c.bf16 %v156_v1, %v155_v0  ;;  %v140_v5 = vld [vmem:[%s2780_s23 + $0x248] sm:$0xff]  ;;  %v158_v7 = vld [vmem:[%s2780_s23 + $0x2d8] sm:$0xff]  ;;  %v141_v10 = vld [vmem:[%s2780_s23 + $0x250] sm:$0xff] }
  0x28   :  { %1954 = vmatpush3.bf16.msra.mxu0 %v1953_v34  ;;  %v2005_v8 = vpack.c.bf16 %v140_v5, %v139_v4  ;;  %v2007_v9 = vpack.c.bf16 %v158_v7, %v157_v6  ;;  %v142_v11 = vld [vmem:[%s2780_s23 + $0x258] sm:$0xff]  ;;  %v159_v12 = vld [vmem:[%s2780_s23 + $0x2e0] sm:$0xff]  ;;  %v160_v13 = vld [vmem:[%s2780_s23 + $0x2e8] sm:$0xff] }
  0x29   :  { %1988 = vmatprep.subr.bf16.mxu0 %v1987_v36  ;;  %v2009_v14 = vpack.c.bf16 %v142_v11, %v141_v10  ;;  %v2011_v15 = vpack.c.bf16 %v160_v13, %v159_v12  ;;  %v143_v16 = vld [vmem:[%s2780_s23 + $0x260] sm:$0xff]  ;;  %v144_v17 = vld [vmem:[%s2780_s23 + $0x268] sm:$0xff]  ;;  %v161_v18 = vld [vmem:[%s2780_s23 + $0x2f0] sm:$0xff] }
  0x2a   :  { %1986 = vmatpush3.bf16.msra.mxu1 %v1985_v35  ;;  %v162_v19 = vld [vmem:[%s2780_s23 + $0x2f8] sm:$0xff]  ;;  %v2013_v20 = vpack.c.bf16 %v144_v17, %v143_v16  ;;  %v145_v22 = vld [vmem:[%s2780_s23 + $0x270] sm:$0xff]  ;;  %v59_v25 = vld [vmem:[%s2762_s0 + $0x20] sm:$0xff] }
  0x2b   :  { %235 = vmatmul.mubr.f32.vlgmr.msra.gmra.mrb[0].mxu0 %v55_v41  ;;  %v2015_v21 = vpack.c.bf16 %v162_v19, %v161_v18  ;;  %v146_v23 = vld [vmem:[%s2780_s23 + $0x278] sm:$0xff]  ;;  %v65_v27 = vld [vmem:[%s2762_s0 + $0x50] sm:$0xff]  ;;  %v397_v28 = vld [vmem:[%s2763_s7] sm:$0xff]  ;;  %2027 = vmatprep.subr.bf16.mxu1 %v2134_v37  ;;  %s2139_s23 = smov 32  }
  0x2c   :  { %1990 = vmatpush3.bf16.msra.mxu0 %v1989_v42  ;;  %239 = vmatprep.mubr.f32.mxu0 %v62_v49  ;;  %v2017_v24 = vpack.c.bf16 %v146_v23, %v145_v22  ;;  %v66_v26 = vld [vmem:[%s2762_s0 + $0x58] sm:$0xff]  ;;  %v398_v29 = vld [vmem:[%s2763_s7 + $0x8] sm:$0xff]  ;;  %v399_v31 = vld [vmem:[%s2763_s7 + $0x10] sm:$0xff]  ;;  %v2137_v42 = vmov 0  }
  0x2d   :  { %310 = vmatmul.mubr.f32.vlgmr.msra.gmra.mrb[0].mxu1 %v57_v43  ;;  %1992 = vmatprep.subr.bf16.mxu0 %v1991_v44  ;;  %v2019_v30 = vpack.c.bf16 %v398_v29, %v397_v28  ;;  %v400_v32 = vld [vmem:[%s2763_s7 + $0x18] sm:$0xff]  ;;  %v492_v34 = vld [vmem:[%s2764_s8] sm:$0xff]  ;;  %v493_v35 = vld [vmem:[%s2764_s8 + $0x8] sm:$0xff] }
  0x2e   :  { %314 = vmatprep.mubr.f32.mxu1 %v64_v50  ;;  %v2023_v33 = vpack.c.bf16 %v400_v32, %v399_v31  ;;  %v494_v36 = vld [vmem:[%s2764_s8 + $0x10] sm:$0xff]  ;;  %v2571_v38 = vpack.c.bf16 %v493_v35, %v492_v34  ;;  %v495_v39 = vld [vmem:[%s2764_s8 + $0x18] sm:$0xff]  ;;  %v2581_v41 = vld [vmem:[%s2765_s1] sm:$0x3]  ;;  %2112 = vset.pattern.permute.xlu0 %v2137_v42 }
  0x2f   :  { %240 = vmatmul.mubr.f32.gmra.mrb[2].mxu0 %v61_v52  ;;  %vm573_vm1 = vcmp.gt.s32.totalorder %v2581_v41, 0  ;;  %vm657_vm2 = vcmp.gt.s32.totalorder %v2581_v41, 1  ;;  %2113 = vset.pattern.permute.xlu1 %v2137_v42  ;;  %v2588_v43 = vpack.c.bf16 %v495_v39, %v494_v36  ;;  %vm909_vm3 = vcmp.gt.s32.totalorder %v2581_v41, 4  ;;  %v1170_v47 = vld [vmem:[%s2766_s2] sm:$0xff] }
  0x30   :  { %1994 = vmatpush3.bf16.msra.mxu0 %v1993_v51  ;;  %384 = vmatprep.mubr.f32.mxu0 %v60_v59  ;;  %v574_v44 = vsel %vm573_vm1, 1, %v2137_v42  ;;  %v658_v45 = vsel %vm657_vm2, 1, %v2137_v42  ;;  %v910_v46 = vsel %vm909_vm3, 1, %v2137_v42  ;;  %vm1077_vm4 = vcmp.gt.s32.totalorder %v2581_v41, 6  ;;  %v1566_v50 = vld [vmem:[%s2767_s6] ss:$0 sm:$0xff] }
  0x31   :  { %315 = vmatmul.mubr.f32.gmra.mrb[2].mxu1 %v63_v56  ;;  %1996 = vmatprep.subr.bf16.mxu0 %v1995_v53  ;;  %v1078_v48 = vsel %vm1077_vm4, 1, %v2137_v42  ;;  %vm741_vm7 = vcmp.gt.s32.totalorder %v2581_v41, 2  ;;  %vm825_vm8 = vcmp.gt.s32.totalorder %v2581_v41, 3  ;;  %vm993_vm9 = vcmp.gt.s32.totalorder %v2581_v41, 5 }
  0x32   :  { %1793 = vmatprep.mubr.msk.f32.mxu1 %vm2135_vm0, %v2136_v40  ;;  %2029 = vmatpush3.bf16.msra.mxu1 %v2571_v38  ;;  %vm1161_vm10 = vcmp.gt.s32.totalorder %v2581_v41, 7  ;;  %vm1191_vm2 = vcmask 408576   ;;  %vm1198_vm3 = vcmask 1041408  }
  0x33   :  { %2030 = vmatprep.subr.bf16.mxu1 %v2134_v37  ;;  %576 = vperm.xlu0 %2112, %v574_v44   ;;  %v1162_v28 = vsel %vm1161_vm10, 1, %v2137_v42  ;;  %vm1278_vm10 = vcmask 97280  }
  0x34   :  { %1998 = vmatpush3.bf16.msra.mxu0 %v1997_v60 }
  0x35   :  { %2000 = vmatprep.subr.bf16.mxu0 %v1999_v61 }
  0x36   :  { %2032 = vmatpush3.bf16.msra.mxu1 %v2588_v43 }
  0x37   :  { %660 = vperm.xlu0 %2112, %v658_v45   ;;  %2033 = vmatprep.subr.bf16.mxu1 %v2134_v37 }
  0x38   :  { %2002 = vmatpush3.bf16.msra.mxu0 %v2001_v2 }
  0x39   :  { %2004 = vmatprep.subr.bf16.mxu0 %v2003_v3  ;;  %1794 = vmatmul.mubr.f32.vlgmr.msra.gmra.mrb[4].mxu1 %v2136_v40 }
  0x3a   :  { %2035 = vmatpush3.bf16.msra.mxu1 %v2571_v38  ;;  %1804 = vmatprep.mubr.msk.f32.mxu1 %vm2135_vm0, %v2136_v40 }
  0x3b   :  { %912 = vperm.xlu0 %2112, %v910_v46   ;;  %2036 = vmatprep.subr.bf16.mxu1 %v2134_v37 }
  0x3c   :  { %2006 = vmatpush3.bf16.msra.mxu0 %v2005_v8 }
  0x3d   :  { %2008 = vmatprep.subr.bf16.mxu0 %v2007_v9 }
  0x3e   :  { %2038 = vmatpush3.bf16.msra.mxu1 %v2588_v43 }
  0x3f   :  { %1173 = vperm.xlu0 %2112, %v1170_v47   ;;  %2039 = vmatprep.subr.bf16.mxu1 %v2134_v37 }
  0x40   :  { %2010 = vmatpush3.bf16.msra.mxu0 %v2009_v14  ;;  %v1567_v14 = vld [vmem:[%s2768_s9] ss:$0 sm:$0xff] }
  0x41   :  { %2012 = vmatprep.subr.bf16.mxu0 %v2011_v15 }
  0x43   :  { %1080 = vperm.xlu0 %2112, %v1078_v48  }
  0x44   :  { %2014 = vmatpush3.bf16.msra.mxu0 %v2013_v20 }
  0x45   :  { %2016 = vmatprep.subr.bf16.mxu0 %v2015_v21 }
  0x48   :  { %2018 = vmatpush3.bf16.msra.mxu0 %v2017_v24  ;;  %v742_v24 = vsel %vm741_vm7, 1, %v2137_v42 }
  0x49   :  { %2020 = vmatprep.subr.bf16.mxu0 %v2019_v30  ;;  %744 = vperm.xlu1 %2113, %v742_v24  }
  0x4b   :  { %385 = vmatmul.mubr.f32.vlgmr.msra.gmra.mrb[4].mxu0 %v59_v25  ;;  %v826_v25 = vsel %vm825_vm8, 1, %v2137_v42  ;;  %vm2138_vm8 = vmmov 1  }
  0x4c   :  { %389 = vmatprep.mubr.f32.mxu0 %v66_v26  ;;  %2022 = vmatpush3.bf16.msra.mxu0 %v2019_v30  ;;  %v994_v26 = vsel %vm993_vm9, 1, %v2137_v42 }
  0x4d   :  { %2024 = vmatprep.subr.bf16.mxu0 %v2023_v33  ;;  %828 = vperm.xlu1 %2113, %v826_v25  }
  0x4f   :  { %390 = vmatmul.mubr.f32.gmra.mrb[6].mxu0 %v65_v27  ;;  %v1171_v27 = vld [vmem:[%s2766_s2 + $0x8] sm:$0xf] }
  0x50   :  { %2026 = vmatpush3.bf16.msra.mxu0 %v2023_v33 }
  0x51   :  { %2045 = vmatprep.subr.bf16.mxu0 %v2134_v37  ;;  %996 = vperm.xlu1 %2113, %v994_v26  }
  0x55   :  { %1176 = vperm.xlu1 %2113, %v1171_v27  }
  0x59   :  { %1164 = vperm.xlu1 %2113, %v1162_v28   ;;  %v1277_v28 = vld [vmem:[%s2770_s3] sm:$0x3] }
  0xb2   :  { %v577_v21 = vpop.permute.xlu0 %576 }
  0xb3   :  { %vm578_vm6 = vcmp.eq.s32.totalorder %v577_v21, 1 }
  0xb6   :  { %v661_v33 = vpop.permute.xlu0 %660 }
  0xb7   :  { %vm662_vm11 = vcmp.eq.s32.totalorder %v661_v33, 1 }
  0xc8   :  { %v745_v44 = vpop.permute.xlu1 %744 }
  0xc9   :  { %vm746_vm12 = vcmp.eq.s32.totalorder %v745_v44, 1 }
  0xfe   :  { %v1622_v49 = vpop.f32.mrb[0].mxu0 }
  0xff   :  { %v1623_v51 = vpop.f32.mrb[1].mxu0 }
 0x100   :  { %v1660_v52 = vpop.f32.mrb[0].mxu1  ;;  %v1624_v53 = vadd.f32 %v1623_v51, %v1622_v49  ;;  %v829_v51 = vpop.permute.xlu1 %828 }
 0x101   :  { %v1661_v54 = vpop.f32.mrb[1].mxu1  ;;  %vm830_vm13 = vcmp.eq.s32.totalorder %v829_v51, 1  ;;  %v1584_v51 = vld [vmem:[%s2773_s11] ss:$0 sm:$0xff] }
 0x102   :  { %v1662_v55 = vadd.f32 %v1661_v54, %v1660_v52  ;;  %v237_v56 = vadd.f32 %v1624_v53, %v1566_v50  ;;  %v1625_v57 = vpop.f32.mrb[2].mxu0 }
 0x103   :  { %v1626_v58 = vpop.f32.mrb[3].mxu0 }
 0x104   :  { %v1663_v59 = vpop.f32.mrb[2].mxu1  ;;  %v312_v60 = vadd.f32 %v1662_v55, %v237_v56  ;;  %v1627_v61 = vadd.f32 %v1626_v58, %v1625_v57  ;;  %v913_v58 = vpop.permute.xlu0 %912 }
 0x105   :  { %v1664_v62 = vpop.f32.mrb[3].mxu1  ;;  %vm914_vm14 = vcmp.eq.s32.totalorder %v913_v58, 1 }
 0x106   :  { %v1665_v63 = vadd.f32 %v1664_v62, %v1663_v59  ;;  %v242_v0 = vadd.f32 %v1627_v61, %v1566_v50  ;;  %v1184_v61 = vld [vmem:[%s2769_s4] sm:$0xff]  ;;  %v1185_v62 = vld [vmem:[%s2769_s4 + $0x8] sm:$0xff] }
 0x108   :  { %v317_v1 = vadd.f32 %v1665_v63, %v242_v0  ;;  %v2075_v63 = vpack.c.bf16 %v1185_v62, %v1184_v61  ;;  %v21_v62 = vstv %s2774_s15 }
 0x109   :  { %22 = vst [vmem:[#allocation3] sm:$0x1] %v21_v62 }
 0x10c   :  { %v567_v12 = vpop.f32.mrb[4].mxu1 }
 0x10d   :  { %v1795_v13 = vpop.f32.mrb[5].mxu1 }
 0x11e   :  { %v1698_v2 = vpop.f32.mrb[4].mxu0 }
 0x11f   :  { %v1699_v3 = vpop.f32.mrb[5].mxu0 }
 0x120   :  { %v1700_v4 = vadd.f32 %v1699_v3, %v1698_v2  ;;  %v1168_v3 = vlaneseq }
 0x122   :  { %v387_v5 = vadd.f32 %v1700_v4, %v312_v60  ;;  %v1701_v6 = vpop.f32.mrb[6].mxu0  ;;  %v1169_v4 = vand.u32 127, %v1168_v3 }
 0x123   :  { %v1702_v7 = vpop.f32.mrb[7].mxu0 }
 0x124   :  { %v395_v8 = vmax.f32 %v387_v5, 0.0  ;;  %v1703_v9 = vadd.f32 %v1702_v7, %v1701_v6  ;;  %v1187_v5 = vld [vmem:[%s2769_s4 + $0x18] sm:$0xff]  ;;  %v1174_v6 = vpop.permute.xlu0 %1173  ;;  %v997_v7 = vpop.permute.xlu1 %996 }
 0x125   :  { %vm1178_vm15 = vcmp.eq.s32.totalorder %v1174_v6, %v1169_v4  ;;  %vm998_vm1 = vcmp.eq.s32.totalorder %v997_v7, 1 }
 0x126   :  { %v392_v10 = vadd.f32 %v1703_v9, %v317_v1  ;;  %1782 = vmatprep.mubr.msk.f32.mxu0 %vm408_vm5, %v395_v8  ;;  %v1577_v13 = vsel %vm1178_vm15, 1.0, %v2136_v40 }
 0x128   :  { %v396_v11 = vmax.f32 %v392_v10, 0.0 }
 0x12a   :  { %1783 = vmatmul.mubr.msk.f32.vlgmr.msra.gmra.mrb[8].mxu0 %vm408_vm5, %v396_v11  ;;  %v1188_v11 = vld [vmem:[%s2769_s4 + $0x20] sm:$0xff] }
 0x12b   :  { %2047 = vmatpush3.bf16.msra.mxu0 %v2571_v38  ;;  %1826 = vmatprep.mubr.msk.f32.mxu0 %vm2135_vm0, %v2136_v40 }
 0x12c   :  { %2048 = vmatprep.subr.bf16.mxu0 %v2134_v37 }
 0x12f   :  { %2050 = vmatpush3.bf16.msra.mxu0 %v2588_v43 }
 0x130   :  { %2057 = vmatprep.subr.bf16.mxu0 %v2134_v37 }
 0x1fd   :  { %v1784_v15 = vpop.f32.mrb[8].mxu0 }
 0x1fe   :  { %v487_v16 = vadd.f32 %v1784_v15, %v1567_v14  ;;  %v481_v17 = vpop.f32.mrb[9].mxu0  ;;  %v1190_v15 = vld [vmem:[%s2769_s4 + $0x30] sm:$0x3] }
 0x1ff   :  { %v482_v18 = vadd.f32 %v1567_v14, %v481_v17 }
 0x200   :  { %491 = vst.msk [vmem:[#allocation2 + $0x8] sm:$0xff] %vm408_vm5, %v487_v16  ;;  %v1177_v16 = vpop.permute.xlu1 %1176 }
 0x201   :  { %490 = vst.msk [vmem:[#allocation2] sm:$0xff] %vm408_vm5, %v482_v18  ;;  %vm1179_vm4 = vcmp.eq.s32.totalorder %v1177_v16, %v1169_v4 }
 0x202   :  { %v1578_v17 = vsel %vm1179_vm4, 1.0, %v2136_v40 }
 0x204   :  { %v1165_v58 = vpop.permute.xlu1 %1164 }
 0x208   :  { %v497_v19 = vld [vmem:[#allocation2] ss:$8 sm:$0x3]  ;;  %v581_v29 = vld [vmem:[#allocation2 + $0x1] ss:$8 sm:$0x3] }
 0x209   :  { %v571_v20 = vadd.f32 %v567_v12, %v497_v19  ;;  %v665_v36 = vld [vmem:[#allocation2 + $0x2] ss:$8 sm:$0x3]  ;;  %v749_v47 = vld [vmem:[#allocation2 + $0x3] ss:$8 sm:$0x3] }
 0x20a   :  { %v833_v54 = vld [vmem:[#allocation2 + $0x4] ss:$8 sm:$0x3]  ;;  %v1001_v18 = vld [vmem:[#allocation2 + $0x6] ss:$8 sm:$0x3] }
 0x20b   :  { %2114 = vtanh.f32 %v571_v20  ;;  %v1189_v12 = vld [vmem:[%s2769_s4 + $0x28] sm:$0xff] }
 0x20c   :  { %v2083_v14 = vpack.c.bf16 %v1189_v12, %v1188_v11 }
 0x215   :  { %v2115_v22 = vpop.eup %2114 }
 0x216   :  { %v579_v23 = vsel %vm578_vm6, %v2115_v22, 0.0  ;;  %v1081_v22 = vpop.permute.xlu0 %1080  ;;  %vm1282_vm6 = vcmask 1043456  }
 0x217   :  { %1805 = vmatmul.mubr.msk.f32.vlgmr.msra.gmra.mrb[6].mxu1 %vm408_vm5, %v579_v23  ;;  %vm1082_vm7 = vcmp.eq.s32.totalorder %v1081_v22, 1  ;;  %vm2089_vm9 = vmpackc.low %vm1282_vm6, %vm2138_vm8 }
 0x218   :  { %2041 = vmatpush3.bf16.msra.mxu1 %v2571_v38  ;;  %1815 = vmatprep.mubr.msk.f32.mxu1 %vm2135_vm0, %v2136_v40 }
 0x219   :  { %2042 = vmatprep.subr.bf16.mxu1 %v2134_v37 }
 0x21c   :  { %2044 = vmatpush3.bf16.msra.mxu1 %v2588_v43 }
 0x21d   :  { %2051 = vmatprep.subr.bf16.mxu1 %v2134_v37 }
 0x2ea   :  { %v651_v30 = vpop.f32.mrb[6].mxu1 }
 0x2eb   :  { %v655_v31 = vadd.f32 %v651_v30, %v581_v29  ;;  %v1806_v32 = vpop.f32.mrb[7].mxu1  ;;  %v1356_v29 = vld [vmem:[%s2771_s10] sm:$0xff]  ;;  %v1357_v30 = vld [vmem:[%s2771_s10 + $0x8] sm:$0xff] }
 0x2ed   :  { %2116 = vtanh.f32 %v655_v31  ;;  %v2092_v31 = vpack.c.bf16 %v1357_v30, %v1356_v29 }
 0x2f7   :  { %v2117_v34 = vpop.eup %2116 }
 0x2f8   :  { %v663_v35 = vsel %vm662_vm11, %v2117_v34, %v579_v23  ;;  %vm1365_vm11 = vcmask 130048  }
 0x2f9   :  { %1816 = vmatmul.mubr.msk.f32.vlgmr.msra.gmra.mrb[8].mxu1 %vm408_vm5, %v663_v35 }
 0x2fa   :  { %2053 = vmatpush3.bf16.msra.mxu1 %v2571_v38  ;;  %1837 = vmatprep.mubr.msk.f32.mxu1 %vm2135_vm0, %v2136_v40 }
 0x2fb   :  { %2054 = vmatprep.subr.bf16.mxu1 %v2134_v37 }
 0x2fe   :  { %2056 = vmatpush3.bf16.msra.mxu1 %v2588_v43 }
 0x2ff   :  { %2063 = vmatprep.subr.bf16.mxu1 %v2134_v37 }
 0x3cc   :  { %v735_v39 = vpop.f32.mrb[8].mxu1 }
 0x3cd   :  { %v739_v41 = vadd.f32 %v735_v39, %v665_v36  ;;  %v1817_v42 = vpop.f32.mrb[9].mxu1  ;;  %v1446_v36 = vld [vmem:[%s2772_s12 + $0x8] sm:$0xff]  ;;  %v1447_v39 = vld [vmem:[%s2772_s12 + $0x10] sm:$0xff] }
 0x3ce   :  { %v1448_v42 = vld [vmem:[%s2772_s12 + $0x18] sm:$0xff] }
 0x3cf   :  { %2118 = vtanh.f32 %v739_v41  ;;  %v2098_v44 = vpack.c.bf16 %v1448_v42, %v1447_v39 }
 0x3d9   :  { %v2119_v45 = vpop.eup %2118 }
 0x3da   :  { %v747_v46 = vsel %vm746_vm12, %v2119_v45, %v663_v35  ;;  %v1449_v45 = vld [vmem:[%s2772_s12 + $0x20] sm:$0xff]  ;;  %vm1460_vm12 = vcmask 523264  }
 0x3db   :  { %1827 = vmatmul.mubr.msk.f32.vlgmr.msra.gmra.mrb[10].mxu0 %vm408_vm5, %v747_v46 }
 0x3dc   :  { %2059 = vmatpush3.bf16.msra.mxu0 %v2571_v38  ;;  %1848 = vmatprep.mubr.msk.f32.mxu0 %vm2135_vm0, %v2136_v40 }
 0x3dd   :  { %2060 = vmatprep.subr.bf16.mxu0 %v2134_v37 }
 0x3e0   :  { %2062 = vmatpush3.bf16.msra.mxu0 %v2588_v43 }
 0x3e1   :  { %2069 = vmatprep.subr.bf16.mxu0 %v2134_v37 }
 0x4ae   :  { %v819_v48 = vpop.f32.mrb[10].mxu0 }
 0x4af   :  { %v823_v49 = vadd.f32 %v819_v48, %v749_v47  ;;  %v1828_v50 = vpop.f32.mrb[11].mxu0  ;;  %v1451_v48 = vld [vmem:[%s2772_s12 + $0x30] sm:$0xff] }
 0x4b1   :  { %2120 = vtanh.f32 %v823_v49  ;;  %v1452_v49 = vld [vmem:[%s2772_s12 + $0x38] sm:$0xff] }
 0x4b2   :  { %v2104_v50 = vpack.c.bf16 %v1452_v49, %v1451_v48 }
 0x4bb   :  { %v2121_v52 = vpop.eup %2120 }
 0x4bc   :  { %v831_v53 = vsel %vm830_vm13, %v2121_v52, %v747_v46  ;;  %v1450_v46 = vld [vmem:[%s2772_s12 + $0x28] sm:$0xff] }
 0x4bd   :  { %1838 = vmatmul.mubr.msk.f32.vlgmr.msra.gmra.mrb[10].mxu1 %vm408_vm5, %v831_v53  ;;  %v2101_v47 = vpack.c.bf16 %v1450_v46, %v1449_v45 }
 0x4be   :  { %2065 = vmatpush3.bf16.msra.mxu1 %v2571_v38  ;;  %1859 = vmatprep.mubr.msk.f32.mxu1 %vm2135_vm0, %v2136_v40 }
 0x4bf   :  { %2066 = vmatprep.subr.bf16.mxu1 %v2134_v37 }
 0x4c2   :  { %2068 = vmatpush3.bf16.msra.mxu1 %v2588_v43 }
 0x4c3   :  { %2076 = vmatprep.subr.bf16.mxu1 %v2075_v63 }
 0x590   :  { %v903_v55 = vpop.f32.mrb[10].mxu1 }
 0x591   :  { %v907_v56 = vadd.f32 %v903_v55, %v833_v54  ;;  %v1839_v57 = vpop.f32.mrb[11].mxu1 }
 0x593   :  { %2122 = vtanh.f32 %v907_v56  ;;  %v1085_v56 = vld [vmem:[#allocation2 + $0x7] ss:$8 sm:$0x3] }
 0x59d   :  { %v2123_v59 = vpop.eup %2122 }
 0x59e   :  { %v915_v60 = vsel %vm914_vm14, %v2123_v59, %v831_v53 }
 0x59f   :  { %1849 = vmatmul.mubr.msk.f32.vlgmr.msra.gmra.mrb[12].mxu0 %vm408_vm5, %v915_v60 }
 0x5a0   :  { %2071 = vmatpush3.bf16.msra.mxu0 %v2571_v38  ;;  %1870 = vmatprep.mubr.msk.f32.mxu0 %vm2135_vm0, %v2136_v40  ;;  %v917_v38 = vld [vmem:[#allocation2 + $0x5] ss:$8 sm:$0x3] }
 0x5a1   :  { %2072 = vmatprep.subr.bf16.mxu0 %v2134_v37 }
 0x5a4   :  { %2074 = vmatpush3.bf16.msra.mxu0 %v2588_v43  ;;  %v1186_v43 = vld [vmem:[%s2769_s4 + $0x10] sm:$0xff] }
 0x5a5   :  { %2087 = vmatprep.subr.bf16.mxu0 %v2134_v37  ;;  %v2079_v9 = vpack.c.bf16 %v1187_v5, %v1186_v43  ;;  %v1589_v5 = vld [vmem:[#allocation3] ss:$0 sm:$0xff] }
 0x672   :  { %v987_v0 = vpop.f32.mrb[12].mxu0 }
 0x673   :  { %v991_v1 = vadd.f32 %v987_v0, %v917_v38  ;;  %v1850_v2 = vpop.f32.mrb[13].mxu0 }
 0x674   :  { %v1588_v2 = vld [vmem:[%s2776_s14] ss:$0 sm:$0xff] }
 0x675   :  { %2124 = vtanh.f32 %v991_v1 }
 0x67f   :  { %v2125_v8 = vpop.eup %2124 }
 0x680   :  { %v999_v10 = vsel %vm998_vm1, %v2125_v8, %v915_v60 }
 0x681   :  { %1860 = vmatmul.mubr.msk.f32.vlgmr.msra.gmra.mrb[12].mxu1 %vm408_vm5, %v999_v10 }
 0x682   :  { %2078 = vmatpush3.bf16.msra.mxu1 %v2075_v63  ;;  %1887 = vmatprep.mubr.msk.f32.mxu1 %vm1191_vm2, %v1577_v13  ;;  %v1586_v63 = vld [vmem:[%s2775_s13] ss:$0 sm:$0xff] }
 0x683   :  { %2080 = vmatprep.subr.bf16.mxu1 %v2079_v9 }
 0x686   :  { %2082 = vmatpush3.bf16.msra.mxu1 %v2079_v9 }
 0x687   :  { %2084 = vmatprep.subr.bf16.mxu1 %v2083_v14 }
 0x68a   :  { %2086 = vmatpush3.bf16.msra.mxu1 %v2083_v14 }
 0x68b   :  { %1885 = vmatprep.subr.msk.mxu1 %vm1198_vm3, %v1190_v15 }
 0x68e   :  { %1886 = vmatpush3.msk.msra.mxu1 %vm1198_vm3, %v1190_v15 }
 0x68f   :  { %1888 = vmatmul.mubr.msk.f32.vlgmr.msra.gmra.mrb[14].mxu1 %vm1191_vm2, %v1578_v17  ;;  %2094 = vmatprep.subr.bf16.mxu1 %v2134_v37 }
 0x690   :  { %1920 = vmatprep.mubr.msk.f32.mxu1 %vm2135_vm0, %v2136_v40 }
 0x754   :  { %v1071_v19 = vpop.f32.mrb[12].mxu1 }
 0x755   :  { %v1075_v20 = vadd.f32 %v1071_v19, %v1001_v18  ;;  %v1861_v21 = vpop.f32.mrb[13].mxu1 }
 0x757   :  { %2126 = vtanh.f32 %v1075_v20 }
 0x761   :  { %v2127_v23 = vpop.eup %2126 }
 0x762   :  { %v1889_v24 = vpop.f32.mrb[14].mxu1  ;;  %v1083_v25 = vsel %vm1082_vm7, %v2127_v23, %v999_v10 }
 0x763   :  { %v1268_v26 = vpop.f32.mrb[15].mxu1  ;;  %1871 = vmatmul.mubr.msk.f32.vlgmr.msra.gmra.mrb[14].mxu0 %vm408_vm5, %v1083_v25 }
 0x764   :  { %v2088_v27 = vpack.c.bf16 %v1889_v24, %v1268_v26  ;;  %1894 = vmatprep.mubr.msk.f32.mxu0 %vm2135_vm0, %v2136_v40 }
 0x766   :  { %2090 = vmatpush3.bf16.msk.msra.mxu0 %vm2089_vm9, %v2088_v27 }
 0x767   :  { %2091 = vmatprep.subr.bf16.mxu0 %v2134_v37 }
 0x769   :  { %1895 = vmatmul.mubr.msk.f32.vlgmr.msra.gmra.mrb[16].mxu0 %vm1278_vm10, %v1277_v28 }
 0x76a   :  { %1901 = vmatprep.mubr.msk.f32.mxu0 %vm2135_vm0, %v2136_v40  ;;  %2093 = vmatpush3.bf16.msra.mxu0 %v2092_v31  ;;  %v1445_v40 = vld [vmem:[%s2772_s12] sm:$0xff]  ;;  %vm1166_vm0 = vcmp.eq.s32.totalorder %v1165_v58, 1 }
 0x76b   :  { %v2095_v41 = vpack.c.bf16 %v1446_v36, %v1445_v40 }
 0x76d   :  { %2096 = vmatpush3.bf16.msra.mxu1 %v2095_v41 }
 0x76e   :  { %2097 = vmatprep.subr.bf16.mxu1 %v2134_v37 }
 0x771   :  { %2099 = vmatpush3.bf16.msra.mxu1 %v2098_v44 }
 0x772   :  { %2100 = vmatprep.subr.bf16.mxu1 %v2134_v37 }
 0x775   :  { %2102 = vmatpush3.bf16.msra.mxu1 %v2101_v47 }
 0x776   :  { %2103 = vmatprep.subr.bf16.mxu1 %v2134_v37 }
 0x779   :  { %2105 = vmatpush3.bf16.msra.mxu1 %v2104_v50 }
 0x836   :  { %v1155_v32 = vpop.f32.mrb[14].mxu0 }
 0x837   :  { %v1872_v33 = vpop.f32.mrb[15].mxu0  ;;  %v1159_v57 = vadd.f32 %v1155_v32, %v1085_v56 }
 0x839   :  { %2128 = vtanh.f32 %v1159_v57 }
 0x83c   :  { %v1352_v34 = vpop.f32.mrb[16].mxu0 }
 0x83d   :  { %v1896_v35 = vpop.f32.mrb[17].mxu0  ;;  %1902 = vmatmul.mubr.msk.f32.vlgmr.msra.gmra.mrb[18].mxu0 %vm1365_vm11, %v1352_v34 }
 0x843   :  { %v2129_v59 = vpop.eup %2128 }
 0x844   :  { %v1167_v60 = vsel %vm1166_vm0, %v2129_v59, %v1083_v25 }
 0x910   :  { %v1435_v52 = vpop.f32.mrb[18].mxu0 }
 0x911   :  { %v1436_v53 = vadd.f32 %v1584_v51, %v1435_v52  ;;  %v1903_v54 = vpop.f32.mrb[19].mxu0 }
 0x913   :  { %v1439_v55 = vmax.f32 %v1436_v53, 0.0 }
 0x915   :  { %1441 = vrot.lane.b32.xlu0 %v1439_v55, %s2139_s23 }
 0x987   :  { %v1442_v37 = vpop.permute.xlu0 %1441 }
 0x988   :  { %v1444_v61 = vsel %vm408_vm5, %v1167_v60, %v1442_v37  ;;  %vm1560_vm5 = vcmask 1024  }
 0x989   :  { %1921 = vmatmul.mubr.msk.f32.vlgmr.msra.gmra.mrb[16].mxu1 %vm1460_vm12, %v1444_v61 }
 0xa5c   :  { %v1530_v38 = vpop.f32.mrb[16].mxu1 }
 0xa5d   :  { %v1531_v0 = vadd.f32 %v1586_v63, %v1530_v38  ;;  %v1922_v1 = vpop.f32.mrb[17].mxu1 }
 0xa5f   :  { %v1534_v3 = vmax.f32 %v1531_v0, 0.0 }
 0xa61   :  { %v1542_v4 = vmul.f32 %v1588_v2, %v1534_v3 }
 0xa63   :  { %v1543_v43 = vsel %vm1198_vm3, %v1542_v4, 0.0 }
 0xa64   :  { %1544 = vadd.xlane.f32.xlu1 %v1543_v43 }
 0xaf1   :  { %v1545_v6 = vpop.xlane.xlu1 %1544 }
 0xaf2   :  { %v1553_v7 = vadd.f32 %v1589_v5, %v1545_v6 }
 0xaf4   :  { %v1554_v8 = vsub.f32 0.0, %v1553_v7 }
 0xaf6   :  { %v1555_v9 = vmul.f32 1.442695, %v1554_v8 }
 0xaf8   :  { %2130 = vpow2.f32 %v1555_v9 }
 0xb02   :  { %v2131_v10 = vpop.eup %2130 }
 0xb03   :  { %v1557_v11 = vadd.f32 1.0, %v2131_v10 }
 0xb05   :  { %2132 = vrcp.f32 %v1557_v11 }
 0xb0f   :  { %v2133_v12 = vpop.eup %2132 }
 0xb10   :  { %1561 = vst.msk [vmem:[%s2777_s16] sm:$0x3] %vm1560_vm5, %v2133_v12 }

</bundles_post_ra>
